<compile_context>
chip_gen: v7x
topology: tpu7x:2x2x1
jax: 0.10.0
libtpu: 0.0.40
codegen_flags: <defaults>
</compile_context>

<pallas_src>
import functools

import jax
import jax.numpy as jnp
from jax.experimental import pallas as pl
from jax.experimental.pallas import tpu as pltpu

NEG_SLOPE = 0.01  # nn.LeakyReLU() default


def _conv3x3_lrelu_kernel(x_ref, w_ref, b_ref, o_ref, *, W, L):
    # x_ref: (1, C, H*W) VMEM  one batch element, spatial flattened on lanes
    # w_ref: (9, C)      VMEM  conv taps, tap t corresponds to (dy, dx) = (t//3, t%3)
    # b_ref: (1,)        SMEM  bias scalar
    # o_ref: (1, 1, L)   VMEM  L = (Ho-1)*W + Wo  (output row in the W-frame)
    x_mat = x_ref[0]                                        # (C, H*W)

    # All 9 taps in a single MXU matmul; K = C contraction, f32 accumulation.
    taps = jnp.dot(w_ref[...], x_mat,
                   preferred_element_type=jnp.float32)      # (9, H*W)

    # out[y*W + x] = sum_t taps[t, y*W + x + (dy*W + dx)]
    # (shifts act on the tiny post-matmul tensor, not the big activation).
    acc = taps[0:1, 0:L]
    for t in range(1, 9):
        off = (t // 3) * W + (t % 3)
        acc = acc + taps[t:t + 1, off:off + L]

    acc = acc + b_ref[0]
    o_ref[0] = jnp.where(acc > 0, acc, NEG_SLOPE * acc)     # LeakyReLU


def conv3x3_leakyrelu(x_nchw, w_oihw, b):
    """x_nchw: (N, C, H, W) f32; w_oihw: (1, C, 3, 3) f32; b: (1,) f32.
    Returns (N, 1, H-2, W-2) f32, matching nn.Conv2d(C, 1, 3) + LeakyReLU."""
    N, C, H, W = x_nchw.shape
    Ho, Wo = H - 2, W - 2
    HW = H * W
    L = (Ho - 1) * W + Wo                       # = Ho*W - 2 (valid output span)

    x_flat = x_nchw.reshape(N, C, HW)           # free view: no HBM transpose
    w_taps = jnp.transpose(w_oihw[0], (1, 2, 0)).reshape(9, C)   # (9, C)

    kernel = functools.partial(_conv3x3_lrelu_kernel, W=W, L=L)

    out = pl.pallas_call(
        kernel,
        out_shape=jax.ShapeDtypeStruct((N, 1, L), jnp.float32),
        grid=(N,),
        in_specs=[
            pl.BlockSpec((1, C, HW), lambda n: (n, 0, 0)),
            pl.BlockSpec((9, C), lambda n: (0, 0)),
            pl.BlockSpec(memory_space=pltpu.MemorySpace.SMEM),
        ],
        out_specs=pl.BlockSpec((1, 1, L), lambda n: (n, 0, 0)),
        compiler_params=pltpu.CompilerParams(
            dimension_semantics=("parallel",),
            vmem_limit_bytes=48 * 1024 * 1024),
    )(x_flat, w_taps, b)

    # Crop the W-framed row to (Ho, Wo). Tiny (~H*W per batch) HBM op.
    out = out[:, 0, :]
    out = jnp.pad(out, ((0, 0), (0, Ho * W - L)))
    out = out.reshape(N, Ho, W)[:, :, :Wo]
    return out[:, None, :, :]                   # (N, 1, Ho, Wo)


class ExtraPallas:
    """JAX/Pallas equivalent of the PyTorch `Extra` module."""

    IN_CHANNELS = (64, 128, 256, 512)

    def __init__(self, key):
        self.weights = []
        self.biases = []
        for c in self.IN_CHANNELS:
            kw, kb, key = jax.random.split(key, 3)
            # PyTorch Conv2d default init: U(-k, k), k = 1/sqrt(fan_in)
            fan_in = c * 3 * 3
            bound = 1.0 / jnp.sqrt(fan_in)
            w = jax.random.uniform(kw, (1, c, 3, 3), jnp.float32,
                                   minval=-bound, maxval=bound)
            bb = jax.random.uniform(kb, (1,), jnp.float32,
                                    minval=-bound, maxval=bound)
            self.weights.append(w)
            self.biases.append(bb)

    def __call__(self, x, index):
        return conv3x3_leakyrelu(x, self.weights[index], self.biases[index])


def _reference(x, w, b):
    # Pure-JAX reference (full-precision conv) for validation.
    out = jax.lax.conv_general_dilated(
        x, w, window_strides=(1, 1), padding="VALID",
        dimension_numbers=("NCHW", "OIHW", "NCHW"),
        precision=jax.lax.Precision.HIGHEST)
    out = out + b.reshape(1, -1, 1, 1)
    return jnp.where(out > 0, out, NEG_SLOPE * out)


if __name__ == "__main__":
    key = jax.random.PRNGKey(0)
    kmod, kx = jax.random.split(key)
    model = ExtraPallas(kmod)

    index = 0                                   # select Conv2d(64, 1, 3)
    N, C, H, W = 2, model.IN_CHANNELS[index], 10, 10
    x = jax.random.normal(kx, (N, C, H, W), jnp.float32)

    out = model(x, index)
    out = jax.block_until_ready(out)

    ref = _reference(x, model.weights[index], model.biases[index])
    assert out.shape == (N, 1, H - 2, W - 2)
    # Tolerance accounts for MXU accumulation-order / pass-rounding differences
    # vs. the XLA conv reference (both f32-accumulated).
    assert jnp.allclose(out, ref, atol=3e-3, rtol=2e-3), \
        float(jnp.max(jnp.abs(out - ref)))

    print("KERNEL_OK")
</pallas_src>

<mosaic_0001>
module attributes {stable_mosaic.version = 11 : i64} {
  func.func @_conv3x3_lrelu_kernel(%arg0: i32, %arg1: memref<1x64x100xf32, #tpu.memory_space<vmem>>, %arg2: memref<9x64xf32, #tpu.memory_space<vmem>>, %arg3: memref<1xf32, #tpu.memory_space<smem>>, %arg4: memref<1x1x78xf32, #tpu.memory_space<vmem>>) attributes {dimension_semantics = [#tpu.dimension_semantics<parallel>], iteration_bounds = array<i64: 2>, scalar_prefetch = 0 : i64, scratch_operands = 0 : i64, tpu.core_type = #tpu.core_type<tc>, window_params = [{transform_indices = @transform_0, window_bounds = array<i64: 1, 64, 100>}, {pipeline_mode = #tpu.pipeline_mode<synchronous>, transform_indices = @transform_1, window_bounds = array<i64: 9, 64>}, {transform_indices = @transform_2, window_bounds = array<i64: 1>}, {transform_indices = @transform_3, window_bounds = array<i64: 1, 1, 78>}]} {
    %c0 = arith.constant 0 : index
    %c0_0 = arith.constant 0 : index
    %c0_1 = arith.constant 0 : index
    %0 = vector.load %arg1[%c0, %c0_0, %c0_1] : memref<1x64x100xf32, #tpu.memory_space<vmem>>, vector<1x64x100xf32>
    %1 = vector.shape_cast %0 : vector<1x64x100xf32> to vector<64x100xf32>
    %c0_2 = arith.constant 0 : index
    %c0_3 = arith.constant 0 : index
    %2 = vector.load %arg2[%c0_2, %c0_3] : memref<9x64xf32, #tpu.memory_space<vmem>>, vector<9x64xf32>
    %cst = arith.constant dense<0.000000e+00> : vector<9x100xf32>
    %3 = tpu.matmul %2, %1, %cst {dimension_numbers = #tpu.dot_dimension_numbers<[1], [0], [0], [1], [0, 0, 1, 1], [], []>} : vector<9x64xf32>, vector<64x100xf32>, vector<9x100xf32> -> vector<9x100xf32>
    %4 = vector.extract_strided_slice %3 {offsets = [0, 0], sizes = [1, 78], strides = [1, 1]} : vector<9x100xf32> to vector<1x78xf32>
    %5 = vector.extract_strided_slice %3 {offsets = [1, 1], sizes = [1, 78], strides = [1, 1]} : vector<9x100xf32> to vector<1x78xf32>
    %6 = arith.addf %4, %5 : vector<1x78xf32>
    %7 = vector.extract_strided_slice %3 {offsets = [2, 2], sizes = [1, 78], strides = [1, 1]} : vector<9x100xf32> to vector<1x78xf32>
    %8 = arith.addf %6, %7 : vector<1x78xf32>
    %9 = vector.extract_strided_slice %3 {offsets = [3, 10], sizes = [1, 78], strides = [1, 1]} : vector<9x100xf32> to vector<1x78xf32>
    %10 = arith.addf %8, %9 : vector<1x78xf32>
    %11 = vector.extract_strided_slice %3 {offsets = [4, 11], sizes = [1, 78], strides = [1, 1]} : vector<9x100xf32> to vector<1x78xf32>
    %12 = arith.addf %10, %11 : vector<1x78xf32>
    %13 = vector.extract_strided_slice %3 {offsets = [5, 12], sizes = [1, 78], strides = [1, 1]} : vector<9x100xf32> to vector<1x78xf32>
    %14 = arith.addf %12, %13 : vector<1x78xf32>
    %15 = vector.extract_strided_slice %3 {offsets = [6, 20], sizes = [1, 78], strides = [1, 1]} : vector<9x100xf32> to vector<1x78xf32>
    %16 = arith.addf %14, %15 : vector<1x78xf32>
    %17 = vector.extract_strided_slice %3 {offsets = [7, 21], sizes = [1, 78], strides = [1, 1]} : vector<9x100xf32> to vector<1x78xf32>
    %18 = arith.addf %16, %17 : vector<1x78xf32>
    %19 = vector.extract_strided_slice %3 {offsets = [8, 22], sizes = [1, 78], strides = [1, 1]} : vector<9x100xf32> to vector<1x78xf32>
    %20 = arith.addf %18, %19 : vector<1x78xf32>
    %c0_4 = arith.constant 0 : index
    %21 = memref.load %arg3[%c0_4] : memref<1xf32, #tpu.memory_space<smem>>
    %22 = vector.broadcast %21 : f32 to vector<1x78xf32>
    %23 = arith.addf %20, %22 : vector<1x78xf32>
    %cst_5 = arith.constant 0.000000e+00 : f32
    %24 = vector.broadcast %cst_5 : f32 to vector<1x78xf32>
    %25 = arith.cmpf ogt, %23, %24 : vector<1x78xf32>
    %cst_6 = arith.constant 0.00999999977 : f32
    %26 = vector.broadcast %cst_6 : f32 to vector<1x78xf32>
    %27 = arith.mulf %26, %23 : vector<1x78xf32>
    %28 = arith.select %25, %23, %27 : vector<1x78xi1>, vector<1x78xf32>
    %c0_7 = arith.constant 0 : index
    %c0_8 = arith.constant 0 : index
    %c0_9 = arith.constant 0 : index
    %29 = vector.load %arg4[%c0_7, %c0_8, %c0_9] : memref<1x1x78xf32, #tpu.memory_space<vmem>>, vector<1x1x78xf32>
    %30 = vector.shape_cast %29 : vector<1x1x78xf32> to vector<1x78xf32>
    %31 = vector.shape_cast %28 : vector<1x78xf32> to vector<1x1x78xf32>
    tpu.vector_store %arg4[%c0_7, %c0_8, %c0_9], %31 {strides = array<i32>} : memref<1x1x78xf32, #tpu.memory_space<vmem>>, vector<1x1x78xf32>,
    return
  }
  func.func @transform_0(%arg0: i32) -> (i32, i32, i32) {
    %c0_i32 = arith.constant 0 : i32
    %c0_i32_0 = arith.constant 0 : i32
    %c0_i32_1 = arith.constant 0 : i32
    return %arg0, %c0_i32, %c0_i32_0 : i32, i32, i32
  }
  func.func @transform_1(%arg0: i32) -> (i32, i32) {
    %c0_i32 = arith.constant 0 : i32
    %c0_i32_0 = arith.constant 0 : i32
    %c0_i32_1 = arith.constant 0 : i32
    return %c0_i32, %c0_i32_0 : i32, i32
  }
  func.func @transform_2(%arg0: i32) -> i32 {
    %c0_i32 = arith.constant 0 : i32
    %c0_i32_0 = arith.constant 0 : i32
    return %c0_i32 : i32
  }
  func.func @transform_3(%arg0: i32) -> (i32, i32, i32) {
    %c0_i32 = arith.constant 0 : i32
    %c0_i32_0 = arith.constant 0 : i32
    %c0_i32_1 = arith.constant 0 : i32
    return %arg0, %c0_i32, %c0_i32_0 : i32, i32, i32
  }
}

</mosaic_0001>

<bundles_post_ra>
// kernel: tpu_custom_call.1
= control target key start
LH: loop header
LB: loop body
LE: loop exit
PB: predicated region body
PF: predicated region fallthrough
CT: control target
= control target key end

     0   :  { %s936_s0 = inlined_call_operand.hbm [shape: f32[2,64,100], index: 0, kind: input, shape index: {}]   ;;  %s937_s1 = inlined_call_operand.hbm [shape: f32[9,64], index: 1, kind: input, shape index: {}]   ;;  %s938_s2 = inlined_call_operand.<no memory space> [shape: f32[1], index: 2, kind: input, shape index: {}]   ;;  %s939_s3 = inlined_call_operand.hbm [shape: f32[2,1,78], index: 3, kind: output, shape index: {}]  }
   0x1   :  { %8 = sst [smem:[#allocation2]] %s938_s2 }
   0x2   :  { %9 = vsyncpa [#allocation4], 0 }
   0x3   :  { %11 = vsyncpa [#allocation4 + $0x1], 0 }
   0x4   :  { %12 = vsyncpa [#allocation7], 0 }
   0x5   :  { %13 = vsyncpa [#allocation5], 0 }
   0x6   :  { %15 = vsyncpa [#allocation5 + $0x1], 0  ;;  %s728_s14 = smov 0   ;;  %s730_s15 = smov 0  }
   0x7   :  { %s732_s16 = smov 0   ;;  %s734_s17 = smov 0  }
   0x8 LB: > { %s749_s2 = sadd.s32 4294967295, %s690_s17   ;;  %s434_s18 = sadd.s32 4294967294, %s690_s17   ;;  %s690_s17 = sphi %s734_s17, %s959_s17   ;;  %s686_s16 = sphi %s732_s16, %s958_s16   ;;  %s682_s15 = sphi %s730_s15, %s957_s15   ;;  %s678_s14 = sphi %s728_s14, %s956_s14  }
   0x9   : > { %p41_p0 = scmp.ne.s32.totalorder %s682_s15, %s678_s14  ;;  %p940_p1 = scmp.eq.s32.totalorder %s749_s2, 0 }
   0xa   : > { %p113_p3 = scmp.eq.s32.totalorder %s434_s18, 1  ;;  %p435_p5 = scmp.ge.s32.totalorder %s690_s17, 1 }
   0xb   : > { %p758_p4 = por %p940_p1, %p41_p0  ;;  %p120_p7 = scmp.lt.s32.totalorder %s690_s17, 3 }
   0xc   : > { %p763_p6 = por %p113_p3, %p41_p0  ;;  %s692_s22 = smov [#allocation6]  }
   0xd   : > { %s943_s19 = scalar_select %p758_p4, 1, 0 }
   0xe   : > { %s944_s20 = scalar_select %p763_p6, 1, 0 }
   0xf   : > { %p768_p8 = pnand %p435_p5, %p120_p7  ;;  %s132_s23 = sshll.u32 %s692_s22, 4  ;;  %s772_s23 = int_to_ptr.vmem [resolvable:$true] %s132_s23 }
  0x10   : > { %s784_s25 = sadd.s32 1, %s690_s17   ;;  %s28_s26 = sadd.s32 1, %s686_s16 }
  0x11   : > { %s945_s21 = scalar_select %p768_p8, 1, 0 }
  0x12   : > { %p503_p9 = pneg %p768_p8  ;;  %s25_s27 = ssub.s32 %s690_s17, %s784_s25 }
  0x13   : > { %s562_s30 = scalar_lea.hbm %s937_s1, 256 }
  0x14   : > { %p779_p11 = pnand %p503_p9, %p940_p1  ;;  %p563_p12 = scmp.ne.s32.totalorder %s937_s1, %s562_s30 }
  0x15   : > { %p569_p5 = scmp.lt.u32.totalorder %s562_s30, %s937_s1 }
  0x16   : > { %p564_p13 = pneg %p779_p11 }
  0x18   : > { %p565_p0 = pnand %p564_p13, %p563_p12 }
  0x1a   : > { %p566_p3 = pneg %p565_p0 }
  0x1c   : > { %p571_p7 = pnand %p569_p5, %p566_p3 }
  0x1e   : > { %574 = shalt.err (!%p571_p7)
}
  0x1f   : > { %s575_s8 = scalar_lea.vmem %s772_s23, 256  ;;  %p583_p2 = scmp.lt.s32.totalorder %s772_s23, %s772_s23 }
  0x20   : > { %p576_p9 = scmp.ne.s32.totalorder %s772_s23, %s575_s8  ;;  %p584_p6 = scmp.lt.s32.totalorder %s575_s8, %s575_s8 }
  0x22   : > { %p578_p10 = pnand %p576_p9, %p564_p13  ;;  %p585_p4 = por %p584_p6, %p583_p2 }
  0x24   : > { %p579_p1 = pneg %p578_p10 }
  0x26   : > { %p586_p8 = pnand %p585_p4, %p579_p1 }
  0x28   : > { %589 = shalt.err (!%p586_p8)
}
  0x29   : > { %s693_s9 = smov 128   ;;  %s694_s10 = smov 8  }
  0x2a   : > { %506 = dma.hbm_to_vmem [thread:$0]  (!%p779_p11), %s937_s1, 256, %s772_s23, [#allocation7], %s693_s9, %s693_s9, %s694_s10  }
  0x2b   : > { %p26_p1 = scmp.eq.s32.totalorder %s25_s27, 0  ;;  %p35_p2 = scmp.ne.s32.totalorder %s686_s16, %s682_s15 }
  0x2c   : > { %p36_p4 = scmp.eq.s32.totalorder %s690_s17, 0  ;;  %p516_p6 = scmp.lt.s32.totalorder %s690_s17, 2 }
  0x2d   : > { %s818_s13 = scalar_select %p26_p1, %s686_s16, %s28_s26  }
  0x2e   : > { %p37_p8 = por %p36_p4, %p35_p2  ;;  %p947_p10 = scmp.eq.s32.totalorder %s749_s2, 1 }
  0x2f   : > { %s149_s22 = sand.u32 1, %s686_s16   ;;  %s449_s24 = sshll.u32 %s690_s17, 10 }
  0x30   : > { %p822_p12 = por %p947_p10, %p35_p2  ;;  %s438_s28 = sshll.u32 %s149_s22, 6 }
  0x31   : > { %s831_s4 = scalar_lea.hbm %s936_s0, %s449_s24  ;;  %s153_s23 = scalar_lea.vmem [#allocation3], %s438_s28 }
  0x32   : > { %s160_s26 = sshll.u32 %s153_s23, 4  ;;  %p833_p11 = pnand %p516_p6, %p37_p8  ;;  %s837_s26 = int_to_ptr.vmem [resolvable:$true] %s160_s26 }
  0x33   : > { %s839_s5 = scalar_lea.sflag [#allocation4], %s149_s22  ;;  %s590_s6 = scalar_lea.hbm %s831_s4, 1024 }
  0x34   : > { %p591_p13 = scmp.ne.s32.totalorder %s831_s4, %s590_s6  ;;  %p592_p0 = pneg %p833_p11 }
  0x35   : > { %s595_s11 = scalar_lea.hbm %s936_s0, 2048  ;;  %p596_p7 = scmp.lt.u32.totalorder %s831_s4, %s936_s0 }
  0x36   : > { %p593_p3 = pnand %p592_p0, %p591_p13  ;;  %p597_p9 = scmp.lt.u32.totalorder %s595_s11, %s590_s6 }
  0x37   : > { %p599_p2 = scmp.lt.u32.totalorder %s590_s6, %s831_s4 }
  0x38   : > { %p594_p5 = pneg %p593_p3  ;;  %p598_p1 = por %p597_p9, %p596_p7 }
  0x3a   : > { %p600_p4 = por %p599_p2, %p598_p1 }
  0x3c   : > { %p601_p6 = pnand %p600_p4, %p594_p5 }
  0x3e   : > { %604 = shalt.err (!%p601_p6)
}
  0x3f   : > { %s605_s22 = scalar_lea.vmem %s837_s26, 1024  ;;  %s695_s28 = smov [#allocation3]  }
  0x40   : > { %p606_p8 = scmp.ne.s32.totalorder %s837_s26, %s605_s22  ;;  %s610_s29 = sshll.u32 %s695_s28, 4  ;;  %s611_s29 = int_to_ptr.vmem [resolvable:$false] %s610_s29 }
  0x41   : > { %s612_s30 = scalar_lea.vmem %s611_s29, 2048  ;;  %p613_p3 = scmp.lt.s32.totalorder %s837_s26, %s611_s29 }
  0x42   : > { %p608_p10 = pnand %p606_p8, %p592_p0  ;;  %p614_p7 = scmp.lt.s32.totalorder %s612_s30, %s605_s22 }
  0x44   : > { %p609_p13 = pneg %p608_p10  ;;  %p615_p9 = por %p614_p7, %p613_p3 }
  0x46   : > { %p616_p1 = pnand %p615_p9, %p609_p13 }
  0x48   : > { %619 = shalt.err (!%p616_p1)
}
  0x49   : > { %510 = dma.hbm_to_vmem [thread:$0]  (!%p833_p11), %s831_s4, 1024, %s837_s26, %s839_s5, %s693_s9, %s693_s9, %s694_s10  }
  0x4a   : > { %p950_p0 = scmp.ne.s32.totalorder %s945_s21, 0 }
  0x4b   : > { %s873_s23 = sand.u32 (!%p950_p0), 1, %s682_s15   ;;  %p951_p5 = scmp.ne.s32.totalorder (!%p950_p0), %s943_s19, 0 }
  0x4c   : > { %172 = sbr.rel (%p950_p0) target bundleno = 473 (0x1d9), region = 32  ;;  %s442_s6 = sshll.u32 (!%p950_p0), %s873_s23, 6 }
  0x4d   : > { %s175_s7 = scalar_lea.sflag (!%p950_p0), [#allocation4], %s873_s23  ;;  %s178_s8 = scalar_lea.vmem (!%p950_p0), [#allocation3], %s442_s6 }
  0x53   : > { %665 = dma.done.wait (%p951_p5), %s175_s7, 1024  }
  0x54   : > { %667 = vsyncadd (%p951_p5), %s175_s7, 4294966272  ;;  %p952_p2 = scmp.eq.s32.totalorder %s749_s2, 0 }
  0x56   : > { %669 = dma.done.wait (%p952_p2), [#allocation7], 256   ;;  %p953_p11 = pmov %p952_p2 }
  0x57   : > { %v204_v0 = vld [vmem:[%s178_s8] sm:$0xff]  ;;  %v205_v1 = vld [vmem:[%s178_s8 + $0x8] sm:$0xff]  ;;  %v206_v2 = vld [vmem:[%s178_s8 + $0x10] sm:$0xff]  ;;  %vm214_vm0 = vcmask 523264   ;;  %s696_s19 = smov 118   ;;  %s697_s21 = smov 127  }
  0x58   : > { %671 = vsyncadd (%p953_p11), [#allocation7], 4294967040  ;;  %v479_v3 = vpack.c.bf16 %v205_v1, %v204_v0  ;;  %v207_v4 = vld [vmem:[%s178_s8 + $0x18] sm:$0xff]  ;;  %v208_v6 = vld [vmem:[%s178_s8 + $0x20] sm:$0xff]  ;;  %s698_s9 = smov 117   ;;  %s699_s10 = smov 126  }
  0x59   : > { %v483_v5 = vpack.c.bf16 %v207_v4, %v206_v2  ;;  %v209_v7 = vld [vmem:[%s178_s8 + $0x28] sm:$0xff]  ;;  %v212_v8 = vld [vmem:[#allocation6] sm:$0xff]  ;;  %v210_v10 = vld [vmem:[%s178_s8 + $0x30] sm:$0xff]  ;;  %s700_s4 = smov 108   ;;  %s701_s26 = smov 116   ;;  %vm343_vm2 = vcmask 630784  }
  0x5a   : > { %480 = vmatprep.subr.bf16.mxu0 %v479_v3  ;;  %476 = vmatprep.mubr.msk.f32.mxu0 %vm214_vm0, %v212_v8  ;;  %v487_v9 = vpack.c.bf16 %v209_v7, %v208_v6  ;;  %v211_v11 = vld [vmem:[%s178_s8 + $0x38] sm:$0xff]  ;;  %v213_v13 = vld [vmem:[#allocation6 + $0x8] sm:$0x1]  ;;  %s702_s27 = smov 106   ;;  %s703_s5 = smov 107  }
  0x5b   : > { %482 = vmatpush3.bf16.msra.mxu0 %v479_v3  ;;  %v491_v12 = vpack.c.bf16 %v211_v11, %v210_v10  ;;  %s337_s11 = sld [smem:[#allocation2]]  ;;  %s446_s12 = sshll.u32 %s749_s2, 4 }
  0x5c   : > { %484 = vmatprep.subr.bf16.mxu0 %v483_v5  ;;  %s203_s24 = scalar_lea.vmem [#allocation8], %s873_s23  ;;  %s892_s30 = scalar_lea.hbm %s939_s3, %s446_s12 }
  0x5d   : > { %s358_s22 = sshll.u32 %s203_s24, 4  ;;  %s346_s6 = scalar_lea.sflag [#allocation5], %s873_s23  ;;  %s894_s22 = int_to_ptr.vmem [resolvable:$true] %s358_s22 }
  0x5e   : > { %s620_s7 = scalar_lea.vmem %s894_s22, 16  ;;  %s704_s2 = smov [#allocation8]  }
  0x5f   : > { %486 = vmatpush3.bf16.msra.mxu0 %v483_v5  ;;  %p621_p4 = scmp.ne.s32.totalorder %s894_s22, %s620_s7  ;;  %s624_s8 = sshll.u32 %s704_s2, 4  ;;  %s625_s8 = int_to_ptr.vmem [resolvable:$false] %s624_s8 }
  0x60   : > { %488 = vmatprep.subr.bf16.mxu0 %v487_v9  ;;  %p627_p10 = scmp.lt.s32.totalorder %s894_s22, %s625_s8 }
  0x61   : > { %v338_v38 = vstv %s337_s11  ;;  %p622_p6 = pnand %p621_p4, %p822_p12 }
  0x63   : > { %490 = vmatpush3.bf16.msra.mxu0 %v487_v9  ;;  %p623_p8 = pneg %p622_p6 }
  0x64   : > { %492 = vmatprep.subr.bf16.mxu0 %v491_v12 }
  0x67   : > { %494 = vmatpush3.bf16.msra.mxu0 %v491_v12 }
  0x6a   : > { %477 = vmatmul.mubr.msk.f32.vlgmr.msra.gmra.mrb[0].mxu0 %vm214_vm0, %v213_v13 }
 0x13d   : > { %v478_v14 = vpop.f32.mrb[0].mxu0 }
 0x13e   : > { %v287_v15 = vpop.f32.mrb[1].mxu0 }
 0x13f   : > { %v307_v16 = vrot.slane %v287_v15, 3  ;;  %v297_v17 = vrot.slane %v287_v15, 1  ;;  %v312_v18 = vrot.slane %v287_v15, 4  ;;  %v302_v19 = vrot.slane %v287_v15, 2 }
 0x140   : > { %v322_v20 = vrot.slane %v287_v15, 6  ;;  %v317_v21 = vrot.slane %v287_v15, 5  ;;  %v327_v22 = vrot.slane %v287_v15, 7 }
 0x141   : > { %308 = vrot.lane.b32.xlu1 %v307_v16, %s696_s19  ;;  %298 = vrot.lane.b32.xlu0 %v297_v17, %s697_s21  ;;  %s626_s19 = scalar_lea.vmem %s625_s8, 32 }
 0x142   : > { %p628_p13 = scmp.lt.s32.totalorder %s626_s19, %s620_s7 }
 0x144   : > { %p629_p3 = por %p628_p13, %p627_p10 }
 0x145   : > { %313 = vrot.lane.b32.xlu1 %v312_v18, %s698_s9  ;;  %303 = vrot.lane.b32.xlu0 %v302_v19, %s699_s10 }
 0x146   : > { %p630_p7 = pnand %p629_p3, %p623_p8 }
 0x149   : > { %323 = vrot.lane.b32.xlu1 %v322_v20, %s700_s4  ;;  %318 = vrot.lane.b32.xlu0 %v317_v21, %s701_s26 }
 0x14d   : > { %333 = vrot.lane.b32.xlu1 %v478_v14, %s702_s27  ;;  %328 = vrot.lane.b32.xlu0 %v327_v22, %s703_s5 }
 0x1b3   : > { %v309_v23 = vpop.permute.xlu1 %308  ;;  %v299_v24 = vpop.permute.xlu0 %298 }
 0x1b4   : > { %v301_v25 = vadd.f32 %v299_v24, %v287_v15 }
 0x1b7   : > { %v314_v26 = vpop.permute.xlu1 %313  ;;  %v304_v27 = vpop.permute.xlu0 %303 }
 0x1b8   : > { %v306_v28 = vadd.f32 %v304_v27, %v301_v25 }
 0x1ba   : > { %v311_v29 = vadd.f32 %v309_v23, %v306_v28 }
 0x1bb   : > { %v319_v30 = vpop.permute.xlu0 %318  ;;  %v324_v32 = vpop.permute.xlu1 %323 }
 0x1bc   : > { %v316_v31 = vadd.f32 %v314_v26, %v311_v29 }
 0x1be   : > { %v321_v33 = vadd.f32 %v319_v30, %v316_v31 }
 0x1bf   : > { %v329_v35 = vpop.permute.xlu0 %328  ;;  %v334_v37 = vpop.permute.xlu1 %333 }
 0x1c0   : > { %v326_v34 = vadd.f32 %v324_v32, %v321_v33 }
 0x1c2   : > { %v331_v36 = vadd.f32 %v329_v35, %v326_v34 }
 0x1c4   : > { %v336_v39 = vadd.f32 %v334_v37, %v331_v36 }
 0x1c6   : > { %v339_v40 = vadd.f32 %v338_v38, %v336_v39 }
 0x1c8   : > { %vm340_vm1 = vcmp.gt.f32.partialorder %v339_v40, 0.0  ;;  %v341_v41 = vmul.f32 0.01, %v339_v40 }
 0x1ca   : > { %v342_v42 = vsel %vm340_vm1, %v339_v40, %v341_v41 }
 0x1cb   : > { %344 = vst.msk [vmem:[%s203_s24] sm:$0x1] %vm343_vm2, %v342_v42 }
 0x1cc   : > { %633 = shalt.err (!%p630_p7)
}
 0x1cd   : > { %s634_s23 = scalar_lea.hbm %s892_s30, 16  ;;  %s638_s10 = scalar_lea.hbm %s939_s3, 32 }
 0x1ce   : > { %p635_p9 = scmp.ne.s32.totalorder %s892_s30, %s634_s23  ;;  %p639_p5 = scmp.lt.u32.totalorder %s892_s30, %s939_s3 }
 0x1cf   : > { %p640_p2 = scmp.lt.u32.totalorder %s638_s10, %s634_s23  ;;  %p642_p4 = scmp.lt.u32.totalorder %s634_s23, %s892_s30 }
 0x1d0   : > { %p636_p1 = pnand %p635_p9, %p822_p12 }
 0x1d1   : > { %p641_p11 = por %p640_p2, %p639_p5 }
 0x1d2   : > { %p637_p0 = pneg %p636_p1 }
 0x1d3   : > { %p643_p6 = por %p642_p4, %p641_p11 }
 0x1d5   : > { %p644_p8 = pnand %p643_p6, %p637_p0 }
 0x1d7   : > { %647 = shalt.err (!%p644_p8)
}
 0x1d8   : > { %501 = dma.vmem_to_hbm [thread:$0]  (%p822_p12), %s894_s22, 16, %s892_s30, %s346_s6  }
 0x1d9 PF: > { %s370_s27 = sand.u32 1, %s678_s14   ;;  %p954_p10 = scmp.ne.s32.totalorder %s944_s20, 0 }
 0x1da   : > { %p955_p13 = scmp.ge.s32.totalorder %s690_s17, 2  ;;  %s371_s5 = scalar_lea.sflag [#allocation5], %s370_s27 }
 0x1dc   : > { %p512_p3 = pnand %p955_p13, %p954_p10 }
 0x1de   : > { %673 = dma.done.wait (!%p512_p3), %s371_s5, 16  }
 0x1df   : > { %675 = vsyncadd (!%p512_p3), %s371_s5, 4294967280  ;;  %p18_p7 = scmp.ge.s32.totalorder %s784_s25, 4   ;;  %s956_s14 = smov %s682_s15 }
 0x1e0   : > { %s957_s15 = smov %s686_s16  ;;  %s958_s16 = smov %s818_s13 }
 0x1e1   : > { %s959_s17 = smov %s784_s25  ;;  %20 = sbr.rel (!%p18_p7) target bundleno = 8 (0x8), region = 81 }
 0x1e8   :  { %375 = vsyncpa [#allocation4], 1 }
 0x1e9   :  { %377 = vsyncpa [#allocation4 + $0x1], 1 }
 0x1ea   :  { %378 = vsyncpa [#allocation7], 1 }
 0x1eb   :  { %379 = vsyncpa [#allocation5], 1 }
 0x1ec   :  { %381 = vsyncpa [#allocation5 + $0x1], 1 }

</bundles_post_ra>
